<compile_context>
chip_gen: v7x
topology: tpu7x:2x2x1
jax: 0.10.0
libtpu: 0.0.40
codegen_flags: <defaults>
</compile_context>

<pallas_src>
import functools

import jax
import jax.numpy as jnp
import numpy as np
from jax.experimental import pallas as pl
from jax.experimental.pallas import tpu as pltpu

EPS = 1e-5  # PyTorch InstanceNorm2d default eps


def basic_block_kernel(x_ref, w_ref, b_ref, o_ref, *, norm: bool):
    # x_ref: (1, KH*KW*Cin, H*W)  bf16 im2col patches for one sample (lanes = H*W)
    # w_ref: (Cout, KH*KW*Cin)    bf16 conv weights, tap-major contraction dim
    # b_ref: (Cout, 1)            f32  conv bias
    # o_ref: (1, Cout, H*W)       f32  output (lanes = H*W -> unmasked stores)
    acc = jnp.dot(w_ref[...], x_ref[0],
                  preferred_element_type=jnp.float32)          # (Cout, H*W) f32

    if norm:
        # InstanceNorm2d (affine=False): per-channel stats over the spatial
        # dims, biased variance.  The conv bias is a per-channel constant and
        # is cancelled exactly by the mean subtraction, so it is skipped.
        mean = jnp.mean(acc, axis=1, keepdims=True)
        centered = acc - mean
        var = jnp.mean(centered * centered, axis=1, keepdims=True)
        acc = centered * jax.lax.rsqrt(var + EPS)
    else:
        acc = acc + b_ref[...]                                  # broadcast over lanes

    o_ref[0] = jnp.maximum(acc, 0.0)                            # ReLU


def _im2col_nchw(x, KH, KW):
    """(N, Cin, H, W) -> (N, KH*KW*Cin, H*W) patches (tap-major, Cin inner)."""
    N, Cin, H, W = x.shape
    ph, pw = KH // 2, KW // 2
    xp = jnp.pad(x, ((0, 0), (0, 0), (ph, ph), (pw, pw)))
    taps = [xp[:, :, kh:kh + H, kw:kw + W].reshape(N, Cin, H * W)
            for kh in range(KH) for kw in range(KW)]
    return jnp.stack(taps, axis=1).reshape(N, KH * KW * Cin, H * W)


def basic_block(x_nchw, weight, bias, *, norm=True):
    """x_nchw: (N, Cin, H, W); weight: (Cout, Cin, KH, KW); bias: (Cout,)."""
    N, Cin, H, W = x_nchw.shape
    Cout, _, KH, KW = weight.shape
    HW = H * W
    Ktot = KH * KW * Cin

    # Wrapper-side glue (plain JAX): bf16 cast + im2col.  At realistic sizes
    # this should be fused into the kernel via a haloed, H-tiled BlockSpec to
    # avoid the extra HBM traffic; at demo sizes it is negligible.
    patches = _im2col_nchw(x_nchw.astype(jnp.bfloat16), KH, KW)   # (N, Ktot, HW)
    # (Cout, Cin, KH, KW) -> (Cout, KH, KW, Cin) -> (Cout, Ktot), tap-major.
    w_r = jnp.transpose(weight, (0, 2, 3, 1)).reshape(Cout, Ktot).astype(jnp.bfloat16)
    b_r = bias.reshape(Cout, 1).astype(jnp.float32)

    kernel = functools.partial(basic_block_kernel, norm=norm)
    out = pl.pallas_call(
        kernel,
        out_shape=jax.ShapeDtypeStruct((N, Cout, HW), jnp.float32),
        grid_spec=pltpu.PrefetchScalarGridSpec(
            num_scalar_prefetch=0,
            grid=(N,),
            in_specs=[
                pl.BlockSpec((1, Ktot, HW), lambda n: (n, 0, 0)),
                pl.BlockSpec((Cout, Ktot), lambda n: (0, 0)),
                pl.BlockSpec((Cout, 1), lambda n: (0, 0)),
            ],
            out_specs=pl.BlockSpec((1, Cout, HW), lambda n: (n, 0, 0)),
        ),
        compiler_params=pltpu.CompilerParams(
            dimension_semantics=("parallel",)),  # batch: no carry -> megacore on v7x
    )(patches, w_r, b_r)
    return out.reshape(N, Cout, H, W)  # already NCHW; no transpose needed


def basic_block_reference(x_nchw, weight, bias, *, norm=True):
    """Pure-JAX f32 reference (NCHW, matches PyTorch semantics)."""
    pad = weight.shape[-1] // 2
    y = jax.lax.conv_general_dilated(
        x_nchw.astype(jnp.float32), weight.astype(jnp.float32),
        window_strides=(1, 1), padding=((pad, pad), (pad, pad)),
        dimension_numbers=("NCHW", "OIHW", "NCHW"))
    y = y + bias.astype(jnp.float32)[None, :, None, None]
    if norm:
        mean = jnp.mean(y, axis=(2, 3), keepdims=True)
        var = jnp.mean((y - mean) ** 2, axis=(2, 3), keepdims=True)
        y = (y - mean) * jax.lax.rsqrt(var + EPS)
    return jnp.maximum(y, 0.0)


if __name__ == "__main__":
    # Small, deterministic configuration: N=2, Cin=4, Cout=8, H=W=16, k=3.
    key = jax.random.PRNGKey(0)
    k_x, k_w, k_b = jax.random.split(key, 3)
    N, Cin, Cout, H, W, K = 2, 4, 8, 16, 16, 3

    x = jax.random.normal(k_x, (N, Cin, H, W), dtype=jnp.float32)
    # Deterministic Conv2d-style init (uniform in +/- 1/sqrt(fan_in)).
    fan_in = Cin * K * K
    bound = 1.0 / np.sqrt(fan_in)
    weight = jax.random.uniform(k_w, (Cout, Cin, K, K), jnp.float32, -bound, bound)
    bias = jax.random.uniform(k_b, (Cout,), jnp.float32, -bound, bound)

    # Tolerances account for the bf16 matmul operands (f32 accumulation).
    for norm_flag in (True, False):
        out = jax.block_until_ready(basic_block(x, weight, bias, norm=norm_flag))
        ref = jax.block_until_ready(
            basic_block_reference(x, weight, bias, norm=norm_flag))
        np.testing.assert_allclose(np.asarray(out), np.asarray(ref),
                                   atol=3e-2, rtol=3e-2)

    print("KERNEL_OK")
</pallas_src>

<mosaic_0001>
module attributes {stable_mosaic.version = 11 : i64} {
  func.func @basic_block_kernel(%arg0: i32, %arg1: memref<1x36x256xbf16, #tpu.memory_space<vmem>>, %arg2: memref<8x36xbf16, #tpu.memory_space<vmem>>, %arg3: memref<8x1xf32, #tpu.memory_space<vmem>>, %arg4: memref<1x8x256xf32, #tpu.memory_space<vmem>>) attributes {dimension_semantics = [#tpu.dimension_semantics<parallel>], iteration_bounds = array<i64: 2>, scalar_prefetch = 0 : i64, scratch_operands = 0 : i64, tpu.core_type = #tpu.core_type<tc>, window_params = [{transform_indices = @transform_0, window_bounds = array<i64: 1, 36, 256>}, {pipeline_mode = #tpu.pipeline_mode<synchronous>, transform_indices = @transform_1, window_bounds = array<i64: 8, 36>}, {pipeline_mode = #tpu.pipeline_mode<synchronous>, transform_indices = @transform_2, window_bounds = array<i64: 8, 1>}, {transform_indices = @transform_3, window_bounds = array<i64: 1, 8, 256>}]} {
    %c0 = arith.constant 0 : index
    %c0_0 = arith.constant 0 : index
    %0 = vector.load %arg2[%c0, %c0_0] : memref<8x36xbf16, #tpu.memory_space<vmem>>, vector<8x36xbf16>
    %c0_1 = arith.constant 0 : index
    %c0_2 = arith.constant 0 : index
    %c0_3 = arith.constant 0 : index
    %1 = vector.load %arg1[%c0_1, %c0_2, %c0_3] : memref<1x36x256xbf16, #tpu.memory_space<vmem>>, vector<1x36x256xbf16>
    %2 = vector.shape_cast %1 : vector<1x36x256xbf16> to vector<36x256xbf16>
    %cst = arith.constant dense<0.000000e+00> : vector<8x256xf32>
    %3 = tpu.matmul %0, %2, %cst {dimension_numbers = #tpu.dot_dimension_numbers<[1], [0], [0], [1], [0, 0, 1, 1], [], []>} : vector<8x36xbf16>, vector<36x256xbf16>, vector<8x256xf32> -> vector<8x256xf32>
    %cst_4 = arith.constant dense<0.000000e+00> : vector<8xf32>
    %4 = vector.multi_reduction <add>, %3, %cst_4 [1] : vector<8x256xf32> to vector<8xf32>
    %5 = vector.shape_cast %4 : vector<8xf32> to vector<8x1xf32>
    %cst_5 = arith.constant 2.560000e+02 : f32
    %6 = vector.broadcast %cst_5 : f32 to vector<8x1xf32>
    %7 = arith.divf %5, %6 : vector<8x1xf32>
    %8 = vector.broadcast %7 : vector<8x1xf32> to vector<8x256xf32>
    %9 = arith.subf %3, %8 : vector<8x256xf32>
    %10 = arith.mulf %9, %9 : vector<8x256xf32>
    %cst_6 = arith.constant dense<0.000000e+00> : vector<8xf32>
    %11 = vector.multi_reduction <add>, %10, %cst_6 [1] : vector<8x256xf32> to vector<8xf32>
    %12 = vector.shape_cast %11 : vector<8xf32> to vector<8x1xf32>
    %cst_7 = arith.constant 2.560000e+02 : f32
    %13 = vector.broadcast %cst_7 : f32 to vector<8x1xf32>
    %14 = arith.divf %12, %13 : vector<8x1xf32>
    %cst_8 = arith.constant 9.99999974E-6 : f32
    %15 = vector.broadcast %cst_8 : f32 to vector<8x1xf32>
    %16 = arith.addf %14, %15 : vector<8x1xf32>
    %17 = math.rsqrt %16 : vector<8x1xf32>
    %18 = vector.broadcast %17 : vector<8x1xf32> to vector<8x256xf32>
    %19 = arith.mulf %9, %18 : vector<8x256xf32>
    %cst_9 = arith.constant 0.000000e+00 : f32
    %20 = vector.broadcast %cst_9 : f32 to vector<8x256xf32>
    %21 = arith.maximumf %19, %20 : vector<8x256xf32>
    %c0_10 = arith.constant 0 : index
    %c0_11 = arith.constant 0 : index
    %c0_12 = arith.constant 0 : index
    %22 = vector.load %arg4[%c0_10, %c0_11, %c0_12] : memref<1x8x256xf32, #tpu.memory_space<vmem>>, vector<1x8x256xf32>
    %23 = vector.shape_cast %22 : vector<1x8x256xf32> to vector<8x256xf32>
    %24 = vector.shape_cast %21 : vector<8x256xf32> to vector<1x8x256xf32>
    tpu.vector_store %arg4[%c0_10, %c0_11, %c0_12], %24 {strides = array<i32>} : memref<1x8x256xf32, #tpu.memory_space<vmem>>, vector<1x8x256xf32>,
    return
  }
  func.func @transform_0(%arg0: i32) -> (i32, i32, i32) {
    %c0_i32 = arith.constant 0 : i32
    %c0_i32_0 = arith.constant 0 : i32
    %c0_i32_1 = arith.constant 0 : i32
    return %arg0, %c0_i32, %c0_i32_0 : i32, i32, i32
  }
  func.func @transform_1(%arg0: i32) -> (i32, i32) {
    %c0_i32 = arith.constant 0 : i32
    %c0_i32_0 = arith.constant 0 : i32
    %c0_i32_1 = arith.constant 0 : i32
    return %c0_i32, %c0_i32_0 : i32, i32
  }
  func.func @transform_2(%arg0: i32) -> (i32, i32) {
    %c0_i32 = arith.constant 0 : i32
    %c0_i32_0 = arith.constant 0 : i32
    %c0_i32_1 = arith.constant 0 : i32
    return %c0_i32, %c0_i32_0 : i32, i32
  }
  func.func @transform_3(%arg0: i32) -> (i32, i32, i32) {
    %c0_i32 = arith.constant 0 : i32
    %c0_i32_0 = arith.constant 0 : i32
    %c0_i32_1 = arith.constant 0 : i32
    return %arg0, %c0_i32, %c0_i32_0 : i32, i32, i32
  }
}

</mosaic_0001>

<bundles_post_ra>
// kernel: tpu_custom_call.1
= control target key start
LH: loop header
LB: loop body
LE: loop exit
PB: predicated region body
PF: predicated region fallthrough
CT: control target
= control target key end

     0   :  { %8 = vsyncpa [#allocation3], 0  ;;  %s608_s0 = inlined_call_operand.vmem [shape: bf16[2,36,256], index: 0, kind: input, shape index: {}]   ;;  %s609_s1 = inlined_call_operand.vmem [shape: bf16[8,36], index: 1, kind: input, shape index: {}]   ;;  %s610_s2 = inlined_call_operand.vmem [shape: f32[8,1], index: 2, kind: input, shape index: {}]   ;;  %s611_s3 = inlined_call_operand.hbm [shape: f32[2,8,256], index: 3, kind: output, shape index: {}]  }
   0x1   :  { %10 = vsyncpa [#allocation3 + $0x1], 0  ;;  %s505_s12 = smov 0   ;;  %s507_s13 = smov 0  }
   0x2   :  { %s509_s14 = smov 0   ;;  %s511_s15 = smov 0  }
   0x3 LB: > { %s526_s2 = sadd.s32 4294967295, %s481_s15   ;;  %s348_s16 = sadd.s32 4294967294, %s481_s15   ;;  %s481_s15 = sphi %s511_s15, %s617_s15   ;;  %s477_s14 = sphi %s509_s14, %s616_s14   ;;  %s473_s13 = sphi %s507_s13, %s615_s13   ;;  %s469_s12 = sphi %s505_s12, %s614_s12  }
   0x4   : > { %s530_s17 = sadd.s32 1, %s481_s15   ;;  %s91_s18 = sadd.s32 1, %s477_s14 }
   0x5   : > { %s88_s19 = ssub.s32 %s481_s15, %s530_s17  ;;  %p101_p0 = scmp.ne.s32.totalorder %s477_s14, %s473_s13 }
   0x6   : > { %p89_p1 = scmp.eq.s32.totalorder %s88_s19, 0  ;;  %p102_p2 = scmp.eq.s32.totalorder %s526_s2, 1 }
   0x7   : > { %p107_p3 = scmp.ne.s32.totalorder %s473_s13, %s469_s12  ;;  %p108_p4 = scmp.eq.s32.totalorder %s348_s16, 1 }
   0x8   : > { %s541_s20 = scalar_select %p89_p1, %s477_s14, %s91_s18  }
   0x9   : > { %p543_p5 = por %p102_p2, %p101_p0  ;;  %p547_p6 = por %p108_p4, %p107_p3 }
   0xa   : > { %p351_p7 = scmp.ge.s32.totalorder %s481_s15, 1  ;;  %p140_p8 = scmp.lt.s32.totalorder %s481_s15, 3 }
   0xc   : > { %p141_p9 = pnand %p351_p7, %p140_p8 }
   0xd   : > { %p164_p10 = scmp.lt.s32.totalorder (!%p141_p9), %s526_s2, 1  ;;  %v483_v0 = vmov (!%p141_p9), 0   ;;  %vm205_vm0 = vcmask (!%p141_p9), 1041408   ;;  %v170_v9 = vld [vmem:[%s609_s1] sm:$0xf] (!%p141_p9)  ;;  %vm201_vm1 = vcmask (!%p141_p9), 293888  }
   0xe   : > { %144 = sbr.rel (%p141_p9) target bundleno = 579 (0x243), region = 32  ;;  %244 = vmatprep.mubr.bf16.mxu0 (!%p141_p9), %v483_v0  ;;  %s161_s30 = sand.u32 (!%p141_p9), 1, %s473_s13  }
   0xf   : > { %s352_s4 = sshll.u32 (!%p141_p9), %s161_s30, 4  ;;  %s367_s5 = sshll.u32 (!%p141_p9), %s526_s2, 8 }
  0x10   : > { %s163_s6 = scalar_lea.vmem (!%p141_p9), [#allocation2], %s352_s4  ;;  %s566_s10 = scalar_lea.hbm (!%p141_p9), %s611_s3, %s367_s5 }
  0x11   : > { %s289_s7 = sshll.u32 (!%p141_p9), %s163_s6, 4  ;;  %s275_s11 = scalar_lea.sflag (!%p141_p9), [#allocation3], %s161_s30  ;;  %s568_s7 = int_to_ptr.vmem [resolvable:$true] %s289_s7 }
  0x12   : > { %s484_s16 = smov (!%p141_p9), [#allocation2]  }
  0x13   : > { %s423_s18 = sshll.u32 (!%p141_p9), %s484_s16, 4  ;;  %s424_s18 = int_to_ptr.vmem [resolvable:$false] %s423_s18 }
  0x14   : > { %s425_s19 = scalar_lea.vmem (!%p141_p9), %s424_s18, 512  ;;  %p426_p0 = scmp.lt.s32.totalorder (!%p141_p9), %s568_s7, %s424_s18 }
  0x15   : > { %s165_s23 = scalar_select %p164_p10, %s526_s2, 1 }
  0x16   : > { %s419_s2 = scalar_lea.vmem %s568_s7, 256 }
  0x17   : > { %s368_s24 = smul.u32 40, %s165_s23  ;;  %p420_p11 = scmp.ne.s32.totalorder %s568_s7, %s419_s2 }
  0x18   : > { %p427_p1 = scmp.lt.s32.totalorder %s425_s19, %s419_s2 }
  0x19   : > { %s168_s27 = scalar_lea.vmem %s608_s0, %s368_s24  ;;  %p421_p12 = pnand %p420_p11, %p543_p5 }
  0x1a   : > { %v409_v1 = vld [vmem:[%s168_s27 + $0x4] ss:$8 sps:$4 sm:$0xff]   ;;  %v411_v2 = vld [vmem:[%s168_s27] ss:$8 sps:$4 sm:$0xff]   ;;  %v412_v3 = vld [vmem:[%s168_s27 + $0x14] ss:$8 sps:$4 sm:$0xff]   ;;  %p428_p2 = por %p427_p1, %p426_p0 }
  0x1b   : > { %212 = vmatprep.subr.bf16.mxu0 %v409_v1  ;;  %v175_v4 = vld [vmem:[%s168_s27 + $0x20] sm:$0x33]  ;;  %v414_v5 = vld [vmem:[%s168_s27 + $0x10] ss:$8 sps:$4 sm:$0xff]   ;;  %p422_p13 = pneg %p421_p12 }
  0x1c   : > { %213 = vmatpush1.bf16.msra.mxu0 %v411_v2  ;;  %v359_v6 = vcombine.high %v175_v4, %v175_v4  ;;  %v358_v7 = vcombine.low %v175_v4, %v175_v4 }
  0x1d   : > { %214 = vmatprep.subr.bf16.mxu0 %v412_v3  ;;  %p429_p3 = pnand %p428_p2, %p422_p13 }
  0x1e   : > { %v207_v8 = vsel %vm205_vm0, %v358_v7, 0 }
  0x20   : > { %215 = vmatpush1.bf16.msra.mxu0 %v414_v5 }
  0x21   : > { %360 = vmatprep.subr.msk.bf16.mxu0 %vm205_vm0, %v359_v6 }
  0x24   : > { %217 = vmatpush1.bf16.msra.mxu0 %v207_v8 }
  0x27   : > { %361 = vmatmul.mubr.msk.bf16.vlgmr.msra.gmra.mrb[0].mxu0 %vm201_vm1, %v170_v9 }
  0xfa   : > { %v246_v10 = vpop.f32.mrb[0].mxu0 }
  0xfb   : > { %v248_v11 = vpop.f32.mrb[1].mxu0 }
  0xfc   : > { %v250_v12 = vpop.f32.mrb[2].mxu0  ;;  %v253_v13 = vadd.f32 %v248_v11, %v246_v10 }
  0xfd   : > { %v251_v14 = vpop.f32.mrb[3].mxu0 }
  0xfe   : > { %254 = vadd.xlane.f32.xlu0 %v253_v13 }
 0x18b   : > { %v255_v15 = vpop.xlane.xlu0 %254 }
 0x18c   : > { %v257_v16 = vmul.f32 0.00390625, %v255_v15 }
 0x18e   : > { %v258_v17 = vsub.f32 %v246_v10, %v257_v16  ;;  %v259_v18 = vsub.f32 %v248_v11, %v257_v16 }
 0x190   : > { %v260_v19 = vmul.f32 %v258_v17, %v258_v17  ;;  %v261_v20 = vmul.f32 %v259_v18, %v259_v18 }
 0x192   : > { %v262_v21 = vadd.f32 %v261_v20, %v260_v19 }
 0x194   : > { %263 = vadd.xlane.f32.xlu0 %v262_v21 }
 0x221   : > { %v264_v22 = vpop.xlane.xlu0 %263 }
 0x222   : > { %v265_v23 = vmul.f32 0.00390625, %v264_v22 }
 0x224   : > { %v266_v24 = vadd.f32 1e-05, %v265_v23 }
 0x226   : > { %417 = vrsqrt.f32 %v266_v24 }
 0x230   : > { %v418_v25 = vpop.eup %417 }
 0x231   : > { %v268_v26 = vmul.f32 %v418_v25, %v258_v17  ;;  %v269_v27 = vmul.f32 %v418_v25, %v259_v18 }
 0x233   : > { %v270_v28 = vmax.f32 %v268_v26, 0.0  ;;  %v271_v29 = vmax.f32 %v269_v27, 0.0 }
 0x235   : > { %272 = vst [vmem:[%s163_s6] sm:$0xff] %v270_v28  ;;  %273 = vst [vmem:[%s163_s6 + $0x8] sm:$0xff] %v271_v29 }
 0x236   : > { %432 = shalt.err (!%p429_p3)
}
 0x237   : > { %s433_s23 = scalar_lea.hbm %s566_s10, 256  ;;  %s437_s26 = scalar_lea.hbm %s611_s3, 512 }
 0x238   : > { %p434_p4 = scmp.ne.s32.totalorder %s566_s10, %s433_s23  ;;  %p438_p9 = scmp.lt.u32.totalorder %s566_s10, %s611_s3 }
 0x239   : > { %p439_p10 = scmp.lt.u32.totalorder %s437_s26, %s433_s23  ;;  %p441_p12 = scmp.lt.u32.totalorder %s433_s23, %s566_s10 }
 0x23a   : > { %p435_p7 = pnand %p434_p4, %p543_p5 }
 0x23b   : > { %p440_p11 = por %p439_p10, %p438_p9 }
 0x23c   : > { %p436_p8 = pneg %p435_p7 }
 0x23d   : > { %p442_p13 = por %p441_p12, %p440_p11 }
 0x23f   : > { %p443_p0 = pnand %p442_p13, %p436_p8 }
 0x241   : > { %446 = shalt.err (!%p443_p0)
}
 0x242   : > { %369 = dma.vmem_to_hbm [thread:$0]  (%p543_p5), %s568_s7, 256, %s566_s10, %s275_s11  }
 0x243 PF: > { %p375_p1 = scmp.ge.s32.totalorder %s481_s15, 2  ;;  %s301_s29 = sand.u32 1, %s469_s12  }
 0x244   : > { %s302_s30 = scalar_lea.sflag [#allocation3], %s301_s29 }
 0x245   : > { %p372_p2 = pnand %p375_p1, %p547_p6 }
 0x247   : > { %464 = dma.done.wait (!%p372_p2), %s302_s30, 256  }
 0x248   : > { %466 = vsyncadd (!%p372_p2), %s302_s30, 4294967040  ;;  %p13_p3 = scmp.ge.s32.totalorder %s530_s17, 4   ;;  %s614_s12 = smov %s473_s13 }
 0x249   : > { %s615_s13 = smov %s477_s14  ;;  %s616_s14 = smov %s541_s20 }
 0x24a   : > { %s617_s15 = smov %s530_s17  ;;  %15 = sbr.rel (!%p13_p3) target bundleno = 3 (0x3), region = 67 }
 0x251   :  { %307 = vsyncpa [#allocation3], 1 }
 0x252   :  { %309 = vsyncpa [#allocation3 + $0x1], 1 }

</bundles_post_ra>
